<compile_context>
chip_gen: v6e
topology: v6e:2x2x1
jax: 0.10.0
libtpu: 0.0.40
codegen_flags: <defaults>
</compile_context>

<pallas_src>
import functools

import jax
import jax.numpy as jnp
from jax.experimental import pallas as pl
from jax.experimental.pallas import tpu as pltpu

EMB_DIM = 32
H1, H2 = 256, 128
BN_EPS = 1e-5
LRELU_SLOPE = 0.2


def _leaky_relu(x):
    return jnp.where(x >= 0, x, LRELU_SLOPE * x)


def _batchnorm_train(x, gamma, beta):
    # torch BatchNorm1d (training mode): per-feature batch mean, *biased* var.
    # Fused form: scale = gamma * rsqrt(var+eps); shift = beta - mean*scale;
    # the (B, F) tensor then sees exactly one mul + one add.
    mean = jnp.mean(x, axis=0, keepdims=True)
    var = jnp.mean(jnp.square(x - mean), axis=0, keepdims=True)
    scale = gamma * jax.lax.rsqrt(var + BN_EPS)
    shift = beta - mean * scale
    return x * scale + shift


def discriminator_kernel(
    xa_ref, xp_ref,                       # (B, EMB_DIM) each  (one micro-batch)
    w1a_ref, w1b_ref, b1_ref, g1_ref, be1_ref,
    w2_ref, b2_ref, g2_ref, be2_ref,
    w3_ref, b3_ref,
    o_ref,                                # (B, 1)
):
    def mm(a, w_ref):
        # Cast activations to the weight dtype (bf16 path on v6e/v7x when the
        # wrapper pre-casts weights); always accumulate in f32 on the MXU.
        return jnp.dot(a.astype(w_ref.dtype), w_ref[...],
                       preferred_element_type=jnp.float32)

    xa = xa_ref[...]
    xp = xp_ref[...]

    # Layer 1: concat([xa, xp], axis=1) @ W1  ==  xa @ W1[:D] + xp @ W1[D:]
    h = mm(xa, w1a_ref) + mm(xp, w1b_ref) + b1_ref[...]
    h = _leaky_relu(h)
    h = _batchnorm_train(h, g1_ref[...], be1_ref[...])

    # Layer 2: spectral-norm Linear -> LeakyReLU -> BatchNorm1d
    h = mm(h, w2_ref) + b2_ref[...]
    h = _leaky_relu(h)
    h = _batchnorm_train(h, g2_ref[...], be2_ref[...])

    # Layer 3: spectral-norm Linear -> Sigmoid
    logits = mm(h, w3_ref) + b3_ref[...]
    o_ref[...] = jax.nn.sigmoid(logits)


def discriminator_forward(emb_active, emb_passive, params, *, use_bf16_matmul=False):
    """Fused discriminator forward.

    Accepts either a single BN batch (B, emb_dim) -> (B, 1), or a stack of G
    independent BN batches (G, B, emb_dim) -> (G, B, 1) evaluated under one
    pallas_call with resident weights (each grid step = one full BN batch, so
    BatchNorm statistics match applying the module to each batch separately).
    """
    squeeze = emb_active.ndim == 2
    if squeeze:
        emb_active = emb_active[None]
        emb_passive = emb_passive[None]
    G, B, D = emb_active.shape

    mm_dtype = jnp.bfloat16 if use_bf16_matmul else jnp.float32
    w1a = params["w1a"].astype(mm_dtype)
    w1b = params["w1b"].astype(mm_dtype)
    w2 = params["w2"].astype(mm_dtype)
    w3 = params["w3"].astype(mm_dtype)

    args = (
        emb_active, emb_passive,
        w1a, w1b, params["b1"], params["g1"], params["be1"],
        w2, params["b2"], params["g2"], params["be2"],
        w3, params["b3"],
    )

    def batch_spec(arr):
        # Block one micro-batch per grid step; leading axis squeezed away.
        return pl.BlockSpec((None, arr.shape[1], arr.shape[2]),
                            lambda g: (g, 0, 0))

    def resident_spec(arr):
        # Full-array block with a constant block index: fetched once, stays
        # VMEM-resident across all grid steps.
        nd = arr.ndim
        return pl.BlockSpec(arr.shape, lambda g: (0,) * nd)

    in_specs = [batch_spec(emb_active), batch_spec(emb_passive)]
    in_specs += [resident_spec(a) for a in args[2:]]
    out_specs = pl.BlockSpec((None, B, 1), lambda g: (g, 0, 0))

    flops = 2 * G * B * (2 * D * H1 + H1 * H2 + H2)
    transcendentals = G * (H1 + H2) + G * B          # BN rsqrt + sigmoid
    bytes_accessed = sum(int(a.size) * a.dtype.itemsize for a in args) + G * B * 4

    out = pl.pallas_call(
        discriminator_kernel,
        out_shape=jax.ShapeDtypeStruct((G, B, 1), jnp.float32),
        grid=(G,),
        in_specs=in_specs,
        out_specs=out_specs,
        compiler_params=pltpu.CompilerParams(
            dimension_semantics=("parallel",)),
        cost_estimate=pl.CostEstimate(
            flops=flops,
            transcendentals=transcendentals,
            bytes_accessed=bytes_accessed),
    )(*args)
    return out[0] if squeeze else out


def spectral_normalize(w):
    # Fixed point of torch.nn.utils.spectral_norm power iteration: W / sigma_max.
    # TODO(synk): torch uses a 1-step power-iteration estimate of sigma; exact
    # SVD sigma is the converged value, so early-training outputs won't bit-match.
    sigma = jnp.linalg.svd(w, compute_uv=False)[0]
    return w / sigma


def init_params(key, emb_dim):
    """Deterministic init mimicking nn.Linear default (uniform +-1/sqrt(fan_in))."""
    dims = [(2 * emb_dim, H1), (H1, H2), (H2, 1)]
    keys = jax.random.split(key, 2 * len(dims))
    params = {}
    ws = []
    for i, (fan_in, fan_out) in enumerate(dims):
        bound = 1.0 / jnp.sqrt(jnp.float32(fan_in))
        w = jax.random.uniform(keys[2 * i], (fan_out, fan_in), jnp.float32, -bound, bound)
        b = jax.random.uniform(keys[2 * i + 1], (fan_out,), jnp.float32, -bound, bound)
        w_sn = spectral_normalize(w)
        ws.append(jnp.transpose(w_sn))                 # (in, out) for x @ W
        params[f"b{i + 1}"] = b.reshape(1, fan_out)
    # W1 pre-split so the kernel never needs the concatenated input.
    params["w1a"] = ws[0][:emb_dim]                    # acts on emb_active
    params["w1b"] = ws[0][emb_dim:]                    # acts on emb_passive
    params["w2"] = ws[1]
    params["w3"] = ws[2]
    # BatchNorm1d affine params (default init: gamma=1, beta=0)
    params["g1"] = jnp.ones((1, H1), jnp.float32)
    params["be1"] = jnp.zeros((1, H1), jnp.float32)
    params["g2"] = jnp.ones((1, H2), jnp.float32)
    params["be2"] = jnp.zeros((1, H2), jnp.float32)
    return params


def reference_forward(emb_active, emb_passive, params):
    x = jnp.concatenate([emb_active, emb_passive], axis=1)
    w1 = jnp.concatenate([params["w1a"], params["w1b"]], axis=0)
    h = _leaky_relu(x @ w1 + params["b1"])
    h = _batchnorm_train(h, params["g1"], params["be1"])
    h = _leaky_relu(h @ params["w2"] + params["b2"])
    h = _batchnorm_train(h, params["g2"], params["be2"])
    return jax.nn.sigmoid(h @ params["w3"] + params["b3"])


if __name__ == "__main__":
    key = jax.random.PRNGKey(0)
    k_params, k_a, k_p = jax.random.split(key, 3)

    params = init_params(k_params, EMB_DIM)

    # G independent micro-batches (each a full BatchNorm batch of size B),
    # all evaluated under a single pallas_call with resident weights.
    G, B = 4, 8
    emb_active = jax.random.normal(k_a, (G, B, EMB_DIM), jnp.float32)
    emb_passive = jax.random.normal(k_p, (G, B, EMB_DIM), jnp.float32)

    fwd = jax.jit(functools.partial(discriminator_forward),
                  static_argnames=("use_bf16_matmul",))

    out = jax.block_until_ready(fwd(emb_active, emb_passive, params))
    assert out.shape == (G, B, 1), out.shape
    assert jnp.all(jnp.isfinite(out))
    ref = jnp.stack(
        [reference_forward(emb_active[g], emb_passive[g], params) for g in range(G)]
    )
    assert jnp.allclose(out, ref, atol=1e-5, rtol=1e-5), (out, ref)

    # 2D path: matches the original module's forward(emb_active, emb_passive).
    out2 = jax.block_until_ready(fwd(emb_active[0], emb_passive[0], params))
    ref2 = reference_forward(emb_active[0], emb_passive[0], params)
    assert out2.shape == (B, 1), out2.shape
    assert jnp.allclose(out2, ref2, atol=1e-5, rtol=1e-5), (out2, ref2)

    print("KERNEL_OK")
</pallas_src>

<mosaic_0001>
module attributes {stable_mosaic.version = 11 : i64} {
  func.func @discriminator_kernel(%arg0: i32, %arg1: memref<1x8x32xf32, #tpu.memory_space<vmem>>, %arg2: memref<1x8x32xf32, #tpu.memory_space<vmem>>, %arg3: memref<32x256xf32, #tpu.memory_space<vmem>>, %arg4: memref<32x256xf32, #tpu.memory_space<vmem>>, %arg5: memref<1x256xf32, #tpu.memory_space<vmem>>, %arg6: memref<1x256xf32, #tpu.memory_space<vmem>>, %arg7: memref<1x256xf32, #tpu.memory_space<vmem>>, %arg8: memref<256x128xf32, #tpu.memory_space<vmem>>, %arg9: memref<1x128xf32, #tpu.memory_space<vmem>>, %arg10: memref<1x128xf32, #tpu.memory_space<vmem>>, %arg11: memref<1x128xf32, #tpu.memory_space<vmem>>, %arg12: memref<128x1xf32, #tpu.memory_space<vmem>>, %arg13: memref<1x1xf32, #tpu.memory_space<vmem>>, %arg14: memref<1x8x1xf32, #tpu.memory_space<vmem>>) attributes {dimension_semantics = [#tpu.dimension_semantics<parallel>], iteration_bounds = array<i64: 4>, scalar_prefetch = 0 : i64, scratch_operands = 0 : i64, tpu.core_type = #tpu.core_type<tc>, window_params = [{transform_indices = @transform_0, window_bounds = array<i64: 1, 8, 32>}, {transform_indices = @transform_1, window_bounds = array<i64: 1, 8, 32>}, {pipeline_mode = #tpu.pipeline_mode<synchronous>, transform_indices = @transform_2, window_bounds = array<i64: 32, 256>}, {pipeline_mode = #tpu.pipeline_mode<synchronous>, transform_indices = @transform_3, window_bounds = array<i64: 32, 256>}, {pipeline_mode = #tpu.pipeline_mode<synchronous>, transform_indices = @transform_4, window_bounds = array<i64: 1, 256>}, {pipeline_mode = #tpu.pipeline_mode<synchronous>, transform_indices = @transform_5, window_bounds = array<i64: 1, 256>}, {pipeline_mode = #tpu.pipeline_mode<synchronous>, transform_indices = @transform_6, window_bounds = array<i64: 1, 256>}, {pipeline_mode = #tpu.pipeline_mode<synchronous>, transform_indices = @transform_7, window_bounds = array<i64: 256, 128>}, {pipeline_mode = #tpu.pipeline_mode<synchronous>, transform_indices = @transform_8, window_bounds = array<i64: 1, 128>}, {pipeline_mode = #tpu.pipeline_mode<synchronous>, transform_indices = @transform_9, window_bounds = array<i64: 1, 128>}, {pipeline_mode = #tpu.pipeline_mode<synchronous>, transform_indices = @transform_10, window_bounds = array<i64: 1, 128>}, {pipeline_mode = #tpu.pipeline_mode<synchronous>, transform_indices = @transform_11, window_bounds = array<i64: 128, 1>}, {pipeline_mode = #tpu.pipeline_mode<synchronous>, transform_indices = @transform_12, window_bounds = array<i64: 1, 1>}, {transform_indices = @transform_13, window_bounds = array<i64: 1, 8, 1>}]} {
    %c0 = arith.constant 0 : index
    %c0_0 = arith.constant 0 : index
    %c0_1 = arith.constant 0 : index
    %0 = vector.load %arg1[%c0, %c0_0, %c0_1] : memref<1x8x32xf32, #tpu.memory_space<vmem>>, vector<1x8x32xf32>
    %1 = vector.shape_cast %0 : vector<1x8x32xf32> to vector<8x32xf32>
    %c0_2 = arith.constant 0 : index
    %c0_3 = arith.constant 0 : index
    %c0_4 = arith.constant 0 : index
    %2 = vector.load %arg2[%c0_2, %c0_3, %c0_4] : memref<1x8x32xf32, #tpu.memory_space<vmem>>, vector<1x8x32xf32>
    %3 = vector.shape_cast %2 : vector<1x8x32xf32> to vector<8x32xf32>
    %c0_5 = arith.constant 0 : index
    %c0_6 = arith.constant 0 : index
    %4 = vector.load %arg3[%c0_5, %c0_6] : memref<32x256xf32, #tpu.memory_space<vmem>>, vector<32x256xf32>
    %cst = arith.constant dense<0.000000e+00> : vector<8x256xf32>
    %5 = tpu.matmul %1, %4, %cst {dimension_numbers = #tpu.dot_dimension_numbers<[1], [0], [0], [1], [0, 0, 1, 1], [], []>} : vector<8x32xf32>, vector<32x256xf32>, vector<8x256xf32> -> vector<8x256xf32>
    %c0_7 = arith.constant 0 : index
    %c0_8 = arith.constant 0 : index
    %6 = vector.load %arg4[%c0_7, %c0_8] : memref<32x256xf32, #tpu.memory_space<vmem>>, vector<32x256xf32>
    %cst_9 = arith.constant dense<0.000000e+00> : vector<8x256xf32>
    %7 = tpu.matmul %3, %6, %cst_9 {dimension_numbers = #tpu.dot_dimension_numbers<[1], [0], [0], [1], [0, 0, 1, 1], [], []>} : vector<8x32xf32>, vector<32x256xf32>, vector<8x256xf32> -> vector<8x256xf32>
    %8 = arith.addf %5, %7 : vector<8x256xf32>
    %c0_10 = arith.constant 0 : index
    %c0_11 = arith.constant 0 : index
    %9 = vector.load %arg5[%c0_10, %c0_11] : memref<1x256xf32, #tpu.memory_space<vmem>>, vector<1x256xf32>
    %10 = vector.broadcast %9 : vector<1x256xf32> to vector<8x256xf32>
    %11 = arith.addf %8, %10 : vector<8x256xf32>
    %cst_12 = arith.constant 0.000000e+00 : f32
    %12 = vector.broadcast %cst_12 : f32 to vector<8x256xf32>
    %13 = arith.cmpf oge, %11, %12 : vector<8x256xf32>
    %cst_13 = arith.constant 2.000000e-01 : f32
    %14 = vector.broadcast %cst_13 : f32 to vector<8x256xf32>
    %15 = arith.mulf %14, %11 : vector<8x256xf32>
    %16 = arith.select %13, %11, %15 : vector<8x256xi1>, vector<8x256xf32>
    %c0_14 = arith.constant 0 : index
    %c0_15 = arith.constant 0 : index
    %17 = vector.load %arg6[%c0_14, %c0_15] : memref<1x256xf32, #tpu.memory_space<vmem>>, vector<1x256xf32>
    %c0_16 = arith.constant 0 : index
    %c0_17 = arith.constant 0 : index
    %18 = vector.load %arg7[%c0_16, %c0_17] : memref<1x256xf32, #tpu.memory_space<vmem>>, vector<1x256xf32>
    %cst_18 = arith.constant dense<0.000000e+00> : vector<256xf32>
    %19 = vector.multi_reduction <add>, %16, %cst_18 [0] : vector<8x256xf32> to vector<256xf32>
    %20 = vector.shape_cast %19 : vector<256xf32> to vector<1x256xf32>
    %cst_19 = arith.constant 8.000000e+00 : f32
    %21 = vector.broadcast %cst_19 : f32 to vector<1x256xf32>
    %22 = arith.divf %20, %21 : vector<1x256xf32>
    %23 = vector.broadcast %22 : vector<1x256xf32> to vector<8x256xf32>
    %24 = arith.subf %16, %23 : vector<8x256xf32>
    %25 = arith.mulf %24, %24 : vector<8x256xf32>
    %cst_20 = arith.constant dense<0.000000e+00> : vector<256xf32>
    %26 = vector.multi_reduction <add>, %25, %cst_20 [0] : vector<8x256xf32> to vector<256xf32>
    %27 = vector.shape_cast %26 : vector<256xf32> to vector<1x256xf32>
    %cst_21 = arith.constant 8.000000e+00 : f32
    %28 = vector.broadcast %cst_21 : f32 to vector<1x256xf32>
    %29 = arith.divf %27, %28 : vector<1x256xf32>
    %cst_22 = arith.constant 9.99999974E-6 : f32
    %30 = vector.broadcast %cst_22 : f32 to vector<1x256xf32>
    %31 = arith.addf %29, %30 : vector<1x256xf32>
    %32 = math.rsqrt %31 : vector<1x256xf32>
    %33 = arith.mulf %17, %32 : vector<1x256xf32>
    %34 = arith.mulf %22, %33 : vector<1x256xf32>
    %35 = arith.subf %18, %34 : vector<1x256xf32>
    %36 = vector.broadcast %33 : vector<1x256xf32> to vector<8x256xf32>
    %37 = arith.mulf %16, %36 : vector<8x256xf32>
    %38 = vector.broadcast %35 : vector<1x256xf32> to vector<8x256xf32>
    %39 = arith.addf %37, %38 : vector<8x256xf32>
    %c0_23 = arith.constant 0 : index
    %c0_24 = arith.constant 0 : index
    %40 = vector.load %arg8[%c0_23, %c0_24] : memref<256x128xf32, #tpu.memory_space<vmem>>, vector<256x128xf32>
    %cst_25 = arith.constant dense<0.000000e+00> : vector<8x128xf32>
    %41 = tpu.matmul %39, %40, %cst_25 {dimension_numbers = #tpu.dot_dimension_numbers<[1], [0], [0], [1], [0, 0, 1, 1], [], []>} : vector<8x256xf32>, vector<256x128xf32>, vector<8x128xf32> -> vector<8x128xf32>
    %c0_26 = arith.constant 0 : index
    %c0_27 = arith.constant 0 : index
    %42 = vector.load %arg9[%c0_26, %c0_27] : memref<1x128xf32, #tpu.memory_space<vmem>>, vector<1x128xf32>
    %43 = vector.broadcast %42 : vector<1x128xf32> to vector<8x128xf32>
    %44 = arith.addf %41, %43 : vector<8x128xf32>
    %cst_28 = arith.constant 0.000000e+00 : f32
    %45 = vector.broadcast %cst_28 : f32 to vector<8x128xf32>
    %46 = arith.cmpf oge, %44, %45 : vector<8x128xf32>
    %cst_29 = arith.constant 2.000000e-01 : f32
    %47 = vector.broadcast %cst_29 : f32 to vector<8x128xf32>
    %48 = arith.mulf %47, %44 : vector<8x128xf32>
    %49 = arith.select %46, %44, %48 : vector<8x128xi1>, vector<8x128xf32>
    %c0_30 = arith.constant 0 : index
    %c0_31 = arith.constant 0 : index
    %50 = vector.load %arg10[%c0_30, %c0_31] : memref<1x128xf32, #tpu.memory_space<vmem>>, vector<1x128xf32>
    %c0_32 = arith.constant 0 : index
    %c0_33 = arith.constant 0 : index
    %51 = vector.load %arg11[%c0_32, %c0_33] : memref<1x128xf32, #tpu.memory_space<vmem>>, vector<1x128xf32>
    %cst_34 = arith.constant dense<0.000000e+00> : vector<128xf32>
    %52 = vector.multi_reduction <add>, %49, %cst_34 [0] : vector<8x128xf32> to vector<128xf32>
    %53 = vector.shape_cast %52 : vector<128xf32> to vector<1x128xf32>
    %cst_35 = arith.constant 8.000000e+00 : f32
    %54 = vector.broadcast %cst_35 : f32 to vector<1x128xf32>
    %55 = arith.divf %53, %54 : vector<1x128xf32>
    %56 = vector.broadcast %55 : vector<1x128xf32> to vector<8x128xf32>
    %57 = arith.subf %49, %56 : vector<8x128xf32>
    %58 = arith.mulf %57, %57 : vector<8x128xf32>
    %cst_36 = arith.constant dense<0.000000e+00> : vector<128xf32>
    %59 = vector.multi_reduction <add>, %58, %cst_36 [0] : vector<8x128xf32> to vector<128xf32>
    %60 = vector.shape_cast %59 : vector<128xf32> to vector<1x128xf32>
    %cst_37 = arith.constant 8.000000e+00 : f32
    %61 = vector.broadcast %cst_37 : f32 to vector<1x128xf32>
    %62 = arith.divf %60, %61 : vector<1x128xf32>
    %cst_38 = arith.constant 9.99999974E-6 : f32
    %63 = vector.broadcast %cst_38 : f32 to vector<1x128xf32>
    %64 = arith.addf %62, %63 : vector<1x128xf32>
    %65 = math.rsqrt %64 : vector<1x128xf32>
    %66 = arith.mulf %50, %65 : vector<1x128xf32>
    %67 = arith.mulf %55, %66 : vector<1x128xf32>
    %68 = arith.subf %51, %67 : vector<1x128xf32>
    %69 = vector.broadcast %66 : vector<1x128xf32> to vector<8x128xf32>
    %70 = arith.mulf %49, %69 : vector<8x128xf32>
    %71 = vector.broadcast %68 : vector<1x128xf32> to vector<8x128xf32>
    %72 = arith.addf %70, %71 : vector<8x128xf32>
    %c0_39 = arith.constant 0 : index
    %c0_40 = arith.constant 0 : index
    %73 = vector.load %arg12[%c0_39, %c0_40] : memref<128x1xf32, #tpu.memory_space<vmem>>, vector<128x1xf32>
    %cst_41 = arith.constant dense<0.000000e+00> : vector<8x1xf32>
    %74 = tpu.matmul %72, %73, %cst_41 {dimension_numbers = #tpu.dot_dimension_numbers<[1], [0], [0], [1], [0, 0, 1, 1], [], []>} : vector<8x128xf32>, vector<128x1xf32>, vector<8x1xf32> -> vector<8x1xf32>
    %c0_42 = arith.constant 0 : index
    %c0_43 = arith.constant 0 : index
    %75 = vector.load %arg13[%c0_42, %c0_43] : memref<1x1xf32, #tpu.memory_space<vmem>>, vector<1x1xf32>
    %76 = vector.broadcast %75 : vector<1x1xf32> to vector<8x1xf32>
    %77 = arith.addf %74, %76 : vector<8x1xf32>
    %78 = arith.negf %77 : vector<8x1xf32>
    %79 = math.exp %78 : vector<8x1xf32>
    %cst_44 = arith.constant 1.000000e+00 : f32
    %80 = vector.broadcast %cst_44 : f32 to vector<8x1xf32>
    %81 = arith.addf %80, %79 : vector<8x1xf32>
    %82 = arith.divf %80, %81 : vector<8x1xf32>
    %c0_45 = arith.constant 0 : index
    %c0_46 = arith.constant 0 : index
    %c0_47 = arith.constant 0 : index
    %83 = vector.load %arg14[%c0_45, %c0_46, %c0_47] : memref<1x8x1xf32, #tpu.memory_space<vmem>>, vector<1x8x1xf32>
    %84 = vector.shape_cast %83 : vector<1x8x1xf32> to vector<8x1xf32>
    %85 = vector.shape_cast %82 : vector<8x1xf32> to vector<1x8x1xf32>
    tpu.vector_store %arg14[%c0_45, %c0_46, %c0_47], %85 {strides = array<i32>} : memref<1x8x1xf32, #tpu.memory_space<vmem>>, vector<1x8x1xf32>,
    return
  }
  func.func @transform_0(%arg0: i32) -> (i32, i32, i32) {
    %c0_i32 = arith.constant 0 : i32
    %c0_i32_0 = arith.constant 0 : i32
    %c0_i32_1 = arith.constant 0 : i32
    return %arg0, %c0_i32, %c0_i32_0 : i32, i32, i32
  }
  func.func @transform_1(%arg0: i32) -> (i32, i32, i32) {
    %c0_i32 = arith.constant 0 : i32
    %c0_i32_0 = arith.constant 0 : i32
    %c0_i32_1 = arith.constant 0 : i32
    return %arg0, %c0_i32, %c0_i32_0 : i32, i32, i32
  }
  func.func @transform_2(%arg0: i32) -> (i32, i32) {
    %c0_i32 = arith.constant 0 : i32
    %c0_i32_0 = arith.constant 0 : i32
    %c0_i32_1 = arith.constant 0 : i32
    return %c0_i32, %c0_i32_0 : i32, i32
  }
  func.func @transform_3(%arg0: i32) -> (i32, i32) {
    %c0_i32 = arith.constant 0 : i32
    %c0_i32_0 = arith.constant 0 : i32
    %c0_i32_1 = arith.constant 0 : i32
    return %c0_i32, %c0_i32_0 : i32, i32
  }
  func.func @transform_4(%arg0: i32) -> (i32, i32) {
    %c0_i32 = arith.constant 0 : i32
    %c0_i32_0 = arith.constant 0 : i32
    %c0_i32_1 = arith.constant 0 : i32
    return %c0_i32, %c0_i32_0 : i32, i32
  }
  func.func @transform_5(%arg0: i32) -> (i32, i32) {
    %c0_i32 = arith.constant 0 : i32
    %c0_i32_0 = arith.constant 0 : i32
    %c0_i32_1 = arith.constant 0 : i32
    return %c0_i32, %c0_i32_0 : i32, i32
  }
  func.func @transform_6(%arg0: i32) -> (i32, i32) {
    %c0_i32 = arith.constant 0 : i32
    %c0_i32_0 = arith.constant 0 : i32
    %c0_i32_1 = arith.constant 0 : i32
    return %c0_i32, %c0_i32_0 : i32, i32
  }
  func.func @transform_7(%arg0: i32) -> (i32, i32) {
    %c0_i32 = arith.constant 0 : i32
    %c0_i32_0 = arith.constant 0 : i32
    %c0_i32_1 = arith.constant 0 : i32
    return %c0_i32, %c0_i32_0 : i32, i32
  }
  func.func @transform_8(%arg0: i32) -> (i32, i32) {
    %c0_i32 = arith.constant 0 : i32
    %c0_i32_0 = arith.constant 0 : i32
    %c0_i32_1 = arith.constant 0 : i32
    return %c0_i32, %c0_i32_0 : i32, i32
  }
  func.func @transform_9(%arg0: i32) -> (i32, i32) {
    %c0_i32 = arith.constant 0 : i32
    %c0_i32_0 = arith.constant 0 : i32
    %c0_i32_1 = arith.constant 0 : i32
    return %c0_i32, %c0_i32_0 : i32, i32
  }
  func.func @transform_10(%arg0: i32) -> (i32, i32) {
    %c0_i32 = arith.constant 0 : i32
    %c0_i32_0 = arith.constant 0 : i32
    %c0_i32_1 = arith.constant 0 : i32
    return %c0_i32, %c0_i32_0 : i32, i32
  }
  func.func @transform_11(%arg0: i32) -> (i32, i32) {
    %c0_i32 = arith.constant 0 : i32
    %c0_i32_0 = arith.constant 0 : i32
    %c0_i32_1 = arith.constant 0 : i32
    return %c0_i32, %c0_i32_0 : i32, i32
  }
  func.func @transform_12(%arg0: i32) -> (i32, i32) {
    %c0_i32 = arith.constant 0 : i32
    %c0_i32_0 = arith.constant 0 : i32
    %c0_i32_1 = arith.constant 0 : i32
    return %c0_i32, %c0_i32_0 : i32, i32
  }
  func.func @transform_13(%arg0: i32) -> (i32, i32, i32) {
    %c0_i32 = arith.constant 0 : i32
    %c0_i32_0 = arith.constant 0 : i32
    %c0_i32_1 = arith.constant 0 : i32
    return %arg0, %c0_i32, %c0_i32_0 : i32, i32, i32
  }
}

</mosaic_0001>

<bundles_post_ra>
// kernel: discriminator_forward.1
= control target key start
LH: loop header
LB: loop body
LE: loop exit
PB: predicated region body
PF: predicated region fallthrough
CT: control target
= control target key end

     0   :  { %s1849_s0 = inlined_call_operand.hbm [shape: f32[4,8,32], index: 0, kind: input, shape index: {}]   ;;  %s1850_s1 = inlined_call_operand.hbm [shape: f32[4,8,32], index: 1, kind: input, shape index: {}]   ;;  %s1851_s2 = inlined_call_operand.vmem [shape: f32[32,256], index: 2, kind: input, shape index: {}]   ;;  %s1852_s3 = inlined_call_operand.vmem [shape: f32[32,256], index: 3, kind: input, shape index: {}]   ;;  %s1853_s4 = inlined_call_operand.vmem [shape: f32[1,256], index: 4, kind: input, shape index: {}]   ;;  %s1854_s5 = inlined_call_operand.vmem [shape: f32[1,256], index: 5, kind: input, shape index: {}]   ;;  %s1855_s6 = inlined_call_operand.vmem [shape: f32[1,256], index: 6, kind: input, shape index: {}]   ;;  %s1856_s7 = inlined_call_operand.hbm [shape: f32[256,128], index: 7, kind: input, shape index: {}]   ;;  %s1857_s8 = inlined_call_operand.vmem [shape: f32[1,128], index: 8, kind: input, shape index: {}]   ;;  %s1858_s9 = inlined_call_operand.vmem [shape: f32[1,128], index: 9, kind: input, shape index: {}]   ;;  %s1859_s10 = inlined_call_operand.vmem [shape: f32[1,128], index: 10, kind: input, shape index: {}]   ;;  %s1860_s11 = inlined_call_operand.vmem [shape: f32[128,1], index: 11, kind: input, shape index: {}]   ;;  %s1861_s12 = inlined_call_operand.<no memory space> [shape: f32[1,1], index: 12, kind: input, shape index: {}]   ;;  %s1862_s13 = inlined_call_operand.vmem [shape: f32[4,8,1], index: 13, kind: output, shape index: {}]  }
   0x1   :  { %1869 = sst [smem:[#allocation14_spill]] %s1856_s7  ;;  %v18_v0 = vstv %s1861_s12 }
   0x2   :  { %1870 = sst [smem:[#allocation15_spill]] %s1859_s10  ;;  %19 = vst [vmem:[#allocation2] sm:$0x1] %v18_v0 }
   0x3   :  { %1871 = sst [smem:[#allocation16_spill]] %s1862_s13 }
   0x4   :  { %20 = vsyncpa [#allocation4], 0 }
   0x5   :  { %22 = vsyncpa [#allocation4 + $0x1], 0 }
   0x6   :  { %23 = vsyncpa [#allocation6], 0 }
   0x7   :  { %25 = vsyncpa [#allocation6 + $0x1], 0  ;;  %s1532_s27 = smov 0   ;;  %s1534_s28 = smov 0  }
   0x8   :  { %s1536_s29 = smov 0   ;;  %s1538_s30 = smov 0  }
   0x9 LB: > { %1872 = sst [smem:[#allocation11_spill]] %s1445_s29  ;;  %s1551_s12 = sadd.s32 4294967295, %s1449_s30   ;;  %s1449_s30 = sphi %s1538_s30, %s1886_s30   ;;  %s1445_s29 = sphi %s1536_s29, %s1888_s29   ;;  %s1441_s28 = sphi %s1534_s28, %s1890_s28   ;;  %s1437_s27 = sphi %s1532_s27, %s1889_s27  }
   0xa   : > { %p51_p0 = scmp.ne.s32.totalorder %s1441_s28, %s1437_s27  ;;  %p1866_p1 = scmp.eq.s32.totalorder %s1551_s12, 0 }
   0xb   : > { %p1149_p2 = scmp.ge.s32.totalorder %s1449_s30, 1  ;;  %p345_p3 = scmp.lt.s32.totalorder %s1449_s30, 5 }
   0xc   : > { %p1559_p4 = por %p1866_p1, %p51_p0  ;;  %s1451_s16 = smov [#allocation7]  }
   0xd   : > { %p1563_p5 = pnand %p1149_p2, %p345_p3  ;;  %s372_s17 = sshll.u32 %s1451_s16, 4  ;;  %s373_s17 = int_to_ptr.vmem [resolvable:$true] %s372_s17 }
   0xe   : > { %s1873_s14 = scalar_select %p1559_p4, 1, 0 }
   0xf   : > { %s1874_s15 = scalar_select %p1563_p5, 1, 0 }
  0x10   : > { %p1263_p6 = pneg %p1563_p5  ;;  %s1576_s19 = sadd.s32 1, %s1449_s30  }
  0x11   : > { %1876 = sst [smem:[#allocation12_spill]] %s1576_s19  ;;  %s38_s20 = sadd.s32 1, %s1445_s29 }
  0x12   : > { %p1571_p7 = pnand %p1263_p6, %p1866_p1  ;;  %s35_s21 = ssub.s32 %s1449_s30, %s1576_s19 }
  0x13   : > { %s1336_s22 = scalar_lea.vmem %s373_s17, 4096  ;;  %p1344_p12 = scmp.lt.s32.totalorder %s373_s17, %s373_s17 }
  0x14   : > { %p1327_p8 = pneg %p1571_p7  ;;  %p1337_p9 = scmp.ne.s32.totalorder %s373_s17, %s1336_s22 }
  0x15   : > { %p1345_p13 = scmp.lt.s32.totalorder %s1336_s22, %s1336_s22 }
  0x16   : > { %p1339_p10 = pnand %p1337_p9, %p1327_p8 }
  0x17   : > { %p1346_p0 = por %p1345_p13, %p1344_p12 }
  0x18   : > { %p1340_p11 = pneg %p1339_p10 }
  0x1a   : > { %p1347_p2 = pnand %p1346_p0, %p1340_p11 }
  0x1c   : > { %1350 = shalt.err (!%p1347_p2)
}
  0x1d   : > { %s1452_s23 = smov 128   ;;  %s1453_s24 = smov 8  }
  0x1e   : > { %s1877_s7 = sld [smem:[#allocation14_spill]]  ;;  %p36_p3 = scmp.eq.s32.totalorder %s35_s21, 0 }
  0x1f   : > { %p45_p6 = scmp.ne.s32.totalorder %s1445_s29, %s1441_s28  ;;  %p46_p8 = scmp.eq.s32.totalorder %s1449_s30, 0 }
  0x20   : > { %p1275_p9 = scmp.lt.s32.totalorder %s1449_s30, 4  ;;  %s401_s16 = sand.u32 1, %s1445_s29  }
  0x21   : > { %s1593_s27 = scalar_select %p36_p3, %s1445_s29, %s38_s20  }
  0x22   : > { %p47_p10 = por %p46_p8, %p45_p6  ;;  %s1596_s22 = sshll.u32 %s401_s16, 3 }
  0x23   : > { %1878 = sst [smem:[#allocation13_spill]] %s1593_s27  ;;  %s1153_s19 = sshll.u32 %s1449_s30, 7 }
  0x24   : > { %1266 = dma.hbm_to_vmem [thread:$0]  (!%p1571_p7), %s1877_s7, 4096, %s373_s17, [#allocation6], %s1452_s23, %s1452_s23, %s1453_s24  }
  0x25   : > { %s1602_s18 = scalar_lea.hbm %s1849_s0, %s1153_s19  ;;  %s405_s17 = scalar_lea.vmem [#allocation3], %s1596_s22 }
  0x26   : > { %s412_s21 = sshll.u32 %s405_s17, 4  ;;  %p1607_p7 = pnand %p1275_p9, %p47_p10  ;;  %s1605_s21 = int_to_ptr.vmem [resolvable:$true] %s412_s21 }
  0x27   : > { %s1614_s25 = scalar_lea.hbm %s1850_s1, %s1153_s19  ;;  %s419_s10 = sand.u32 1, %s1449_s30  }
  0x28   : > { %s402_s13 = scalar_lea.sflag [#allocation4], %s401_s16  ;;  %s1351_s26 = scalar_lea.hbm %s1602_s18, 128 }
  0x29   : > { %p1352_p11 = scmp.ne.s32.totalorder %s1602_s18, %s1351_s26  ;;  %p1353_p12 = pneg %p1607_p7 }
  0x2a   : > { %s1356_s27 = scalar_lea.hbm %s1849_s0, 512  ;;  %p1357_p2 = scmp.lt.s32.totalorder %s1602_s18, %s1849_s0 }
  0x2b   : > { %p1354_p13 = pnand %p1353_p12, %p1352_p11  ;;  %p1358_p3 = scmp.lt.s32.totalorder %s1356_s27, %s1351_s26 }
  0x2d   : > { %p1355_p0 = pneg %p1354_p13  ;;  %p1359_p6 = por %p1358_p3, %p1357_p2 }
  0x2f   : > { %p1360_p8 = pnand %p1359_p6, %p1355_p0 }
  0x31   : > { %1363 = shalt.err (!%p1360_p8)
}
  0x32   : > { %s1364_s19 = scalar_lea.vmem %s1605_s21, 128  ;;  %s1454_s7 = smov [#allocation3]  }
  0x33   : > { %p1365_p9 = scmp.ne.s32.totalorder %s1605_s21, %s1364_s19  ;;  %s1369_s16 = sshll.u32 %s1454_s7, 4  ;;  %s1370_s16 = int_to_ptr.vmem [resolvable:$false] %s1369_s16 }
  0x34   : > { %s1371_s24 = scalar_lea.vmem %s1370_s16, 256  ;;  %p1372_p13 = scmp.lt.s32.totalorder %s1605_s21, %s1370_s16 }
  0x35   : > { %p1367_p10 = pnand %p1365_p9, %p1353_p12  ;;  %p1373_p1 = scmp.lt.s32.totalorder %s1371_s24, %s1364_s19 }
  0x37   : > { %p1368_p11 = pneg %p1367_p10  ;;  %p1374_p4 = por %p1373_p1, %p1372_p13 }
  0x39   : > { %p1375_p2 = pnand %p1374_p4, %p1368_p11 }
  0x3b   : > { %1378 = shalt.err (!%p1375_p2)
}
  0x3c   : > { %1270 = dma.hbm_to_vmem [thread:$0]  (!%p1607_p7), %s1602_s18, 128, %s1605_s21, %s402_s13  }
  0x3d   : > { %s423_s29 = scalar_lea.vmem [#allocation5], %s1596_s22  ;;  %s420_s26 = scalar_lea.sflag [#allocation6], %s419_s10 }
  0x3e   : > { %s430_s27 = sshll.u32 %s423_s29, 4  ;;  %s1379_s17 = scalar_lea.hbm %s1614_s25, 128  ;;  %s431_s27 = int_to_ptr.vmem [resolvable:$true] %s430_s27 }
  0x3f   : > { %p1380_p1 = scmp.ne.s32.totalorder %s1614_s25, %s1379_s17  ;;  %s1384_s7 = scalar_lea.hbm %s1850_s1, 512 }
  0x40   : > { %p1385_p3 = scmp.lt.s32.totalorder %s1614_s25, %s1850_s1  ;;  %p1386_p6 = scmp.lt.s32.totalorder %s1384_s7, %s1379_s17 }
  0x41   : > { %p1382_p4 = pnand %p1380_p1, %p1353_p12 }
  0x42   : > { %p1387_p8 = por %p1386_p6, %p1385_p3 }
  0x43   : > { %p1383_p0 = pneg %p1382_p4 }
  0x45   : > { %p1388_p9 = pnand %p1387_p8, %p1383_p0 }
  0x47   : > { %1391 = shalt.err (!%p1388_p9)
}
  0x48   : > { %s1392_s30 = scalar_lea.vmem %s431_s27, 128  ;;  %s1455_s22 = smov [#allocation5]  }
  0x49   : > { %p1393_p10 = scmp.ne.s32.totalorder %s431_s27, %s1392_s30  ;;  %s1397_s18 = sshll.u32 %s1455_s22, 4  ;;  %s1398_s18 = int_to_ptr.vmem [resolvable:$false] %s1397_s18 }
  0x4a   : > { %s1399_s21 = scalar_lea.vmem %s1398_s18, 256  ;;  %p1400_p2 = scmp.lt.s32.totalorder %s431_s27, %s1398_s18 }
  0x4b   : > { %p1395_p11 = pnand %p1393_p10, %p1353_p12  ;;  %p1401_p1 = scmp.lt.s32.totalorder %s1399_s21, %s1392_s30 }
  0x4d   : > { %p1396_p13 = pneg %p1395_p11  ;;  %p1402_p4 = por %p1401_p1, %p1400_p2 }
  0x4f   : > { %p1403_p5 = pnand %p1402_p4, %p1396_p13 }
  0x51   : > { %1406 = shalt.err (!%p1403_p5)
}
  0x52   : > { %1273 = dma.hbm_to_vmem [thread:$0]  (!%p1607_p7), %s1614_s25, 128, %s431_s27, %s420_s26  }
  0x53   : > { %p1880_p0 = scmp.ne.s32.totalorder %s1874_s15, 0 }
  0x54   : > { %s441_s10 = sand.u32 (!%p1880_p0), 1, %s1441_s28   ;;  %p1881_p12 = scmp.ne.s32.totalorder (!%p1880_p0), %s1873_s14, 0 }
  0x55   : > { %439 = sbr.rel (%p1880_p0) target bundleno = 870 (0x366), region = 72  ;;  %s1665_s13 = sshll.u32 (!%p1880_p0), %s441_s10, 3 }
  0x56   : > { %s442_s29 = scalar_lea.sflag (!%p1880_p0), [#allocation4], %s441_s10  ;;  %s445_s17 = scalar_lea.vmem (!%p1880_p0), [#allocation3], %s1665_s13 }
  0x5a   : > { %1424 = dma.done.wait (%p1881_p12), %s442_s29, 128  }
  0x5b   : > { %1426 = vsyncadd (%p1881_p12), %s442_s29, 4294967168  ;;  %s450_s20 = sand.u32 1, %s1551_s12   ;;  %s454_s15 = scalar_lea.vmem [#allocation5], %s1665_s13 }
  0x5c   : > { %s451_s25 = scalar_lea.sflag [#allocation6], %s450_s20 }
  0x5d   : > { %1428 = dma.done.wait (%p1881_p12), %s451_s25, 128  }
  0x5e   : > { %1430 = vsyncadd (%p1881_p12), %s451_s25, 4294967168  ;;  %p1882_p5 = scmp.eq.s32.totalorder %s1551_s12, 0 }
  0x60   : > { %1432 = dma.done.wait (%p1882_p5), [#allocation6], 4096   ;;  %p1883_p7 = pmov %p1882_p5 }
  0x61   : > { %v1456_v1 = vmov 0.0   ;;  %v526_v2 = vld [vmem:[%s1852_s3 + $0x38] sm:$0xff]  ;;  %v525_v4 = vld [vmem:[%s1852_s3 + $0x30] sm:$0xff]  ;;  %v524_v6 = vld [vmem:[%s1852_s3 + $0x28] sm:$0xff]  ;;  %vm527_vm0 = vcmask 261120   ;;  %v678_v52 = vlaneseq  ;;  %vm1458_vm3 = vmmov 0  }
  0x62   : > { %1434 = vsyncadd (%p1883_p7), [#allocation6], 4294963200  ;;  %595 = vmatprep.mubr.f32.mxu0 %v1456_v1  ;;  %669 = vmatprep.mubr.f32.mxu1 %v1456_v1  ;;  %v518_v3 = vld [vmem:[%s1851_s2 + $0x38] sm:$0xff]  ;;  %v517_v5 = vld [vmem:[%s1851_s2 + $0x30] sm:$0xff]  ;;  %s1884_s19 = sld [smem:[#allocation15_spill]]  ;;  %p505_p3 = scmp.lt.s32.totalorder %s1551_s12, 3 }
  0x63   : > { %555 = vmatprep.subr.mxu0 %v526_v2  ;;  %629 = vmatprep.subr.mxu1 %v518_v3  ;;  %v516_v7 = vld [vmem:[%s1851_s2 + $0x28] sm:$0xff]  ;;  %v523_v8 = vld [vmem:[%s1852_s3 + $0x20] sm:$0xff]  ;;  %v522_v10 = vld [vmem:[%s1852_s3 + $0x18] sm:$0xff]  ;;  %v679_v53 = vshrl.u32 %v678_v52, 7  ;;  %s1885_s24 = sld [smem:[#allocation16_spill]]  ;;  %vm1049_vm5 = vcmask 7168  }
  0x64   : > { %556 = vmatpush1.msra.mxu0 %v525_v4  ;;  %630 = vmatpush1.msra.mxu1 %v517_v5  ;;  %v515_v9 = vld [vmem:[%s1851_s2 + $0x20] sm:$0xff]  ;;  %v514_v11 = vld [vmem:[%s1851_s2 + $0x18] sm:$0xff]  ;;  %v521_v12 = vld [vmem:[%s1852_s3 + $0x10] sm:$0xff]  ;;  %s1892_s12 = smov (!%p505_p3, %s1551_s12), 3 }
  0x65   : > { %557 = vmatprep.subr.mxu0 %v524_v6  ;;  %631 = vmatprep.subr.mxu1 %v516_v7  ;;  %v513_v13 = vld [vmem:[%s1851_s2 + $0x10] sm:$0xff]  ;;  %v520_v14 = vld [vmem:[%s1852_s3 + $0x8] sm:$0xff]  ;;  %v519_v16 = vld [vmem:[%s1852_s3] sm:$0xff]  ;;  %v1737_v54 = vsub.s32 0, %v679_v53  ;;  %v1742_v56 = vsub.s32 1, %v679_v53  ;;  %s1160_s14 = sshll.u32 %s1892_s12, 3 }
  0x66   : > { %558 = vmatpush1.msra.mxu0 %v523_v8  ;;  %632 = vmatpush1.msra.mxu1 %v515_v9  ;;  %v512_v15 = vld [vmem:[%s1851_s2 + $0x8] sm:$0xff]  ;;  %v511_v17 = vld [vmem:[%s1851_s2] sm:$0xff]  ;;  %v831_v22 = vld [vmem:[#allocation7 + $0xf0] sm:$0xff] }
  0x67   : > { %559 = vmatprep.subr.mxu0 %v522_v10  ;;  %633 = vmatprep.subr.mxu1 %v514_v11  ;;  %v510_v18 = vld [vmem:[%s454_s15] sm:$0xff]  ;;  %v509_v19 = vld [vmem:[%s445_s17] sm:$0xff] }
  0x68   : > { %560 = vmatpush1.msra.mxu0 %v521_v12  ;;  %634 = vmatpush1.msra.mxu1 %v513_v13  ;;  %v832_v20 = vld [vmem:[#allocation7 + $0xf8] sm:$0xff]  ;;  %v815_v23 = vld [vmem:[#allocation7 + $0x70] sm:$0xff]  ;;  %v830_v24 = vld [vmem:[#allocation7 + $0xe8] sm:$0xff] }
  0x69   : > { %561 = vmatprep.subr.mxu0 %v520_v14  ;;  %635 = vmatprep.subr.mxu1 %v512_v15  ;;  %v816_v21 = vld [vmem:[#allocation7 + $0x78] sm:$0xff]  ;;  %v814_v25 = vld [vmem:[#allocation7 + $0x68] sm:$0xff]  ;;  %v829_v26 = vld [vmem:[#allocation7 + $0xe0] sm:$0xff]  ;;  %s508_s30 = scalar_lea.vmem %s1885_s24, %s1160_s14 }
  0x6a   : > { %562 = vmatpush1.msra.mxu0 %v519_v16  ;;  %636 = vmatpush1.msra.mxu1 %v511_v17  ;;  %v813_v27 = vld [vmem:[#allocation7 + $0x60] sm:$0xff]  ;;  %v828_v28 = vld [vmem:[#allocation7 + $0xd8] sm:$0xff]  ;;  %v827_v30 = vld [vmem:[#allocation7 + $0xd0] sm:$0xff] }
  0x6b   : > { %1161 = vmatmul.mubr.msk.f32.vlgmr.msra.gmra.mxu0 %vm527_vm0, %v510_v18  ;;  %1162 = vmatmul.mubr.msk.f32.vlgmr.msra.gmra.mxu1 %vm527_vm0, %v509_v19  ;;  %v812_v29 = vld [vmem:[#allocation7 + $0x58] sm:$0xff]  ;;  %v811_v31 = vld [vmem:[#allocation7 + $0x50] sm:$0xff]  ;;  %v826_v32 = vld [vmem:[#allocation7 + $0xc8] sm:$0xff] }
  0x6c   : > { %1220 = vmatprep.subr.mxu1 %v1456_v1  ;;  %1168 = vmatprep.subr.mxu0 %v832_v20  ;;  %v810_v33 = vld [vmem:[#allocation7 + $0x48] sm:$0xff]  ;;  %v825_v34 = vld [vmem:[#allocation7 + $0xc0] sm:$0xff]  ;;  %v824_v36 = vld [vmem:[#allocation7 + $0xb8] sm:$0xff] }
  0x6d   : > { %1169 = vmatpush3.msra.mxu0 %v816_v21  ;;  %v809_v35 = vld [vmem:[#allocation7 + $0x40] sm:$0xff]  ;;  %v808_v37 = vld [vmem:[#allocation7 + $0x38] sm:$0xff]  ;;  %v823_v38 = vld [vmem:[#allocation7 + $0xb0] sm:$0xff]  ;;  %1252 = vmatprep.mubr.msk.f32.mxu1 %vm1458_vm3, %v1456_v1 }
  0x6e   : > { %1170 = vmatprep.subr.mxu0 %v831_v22  ;;  %v807_v39 = vld [vmem:[#allocation7 + $0x30] sm:$0xff]  ;;  %v822_v40 = vld [vmem:[#allocation7 + $0xa8] sm:$0xff]  ;;  %v821_v42 = vld [vmem:[#allocation7 + $0xa0] sm:$0xff] }
  0x6f   : > { %1171 = vmatpush3.msra.mxu0 %v815_v23  ;;  %v806_v41 = vld [vmem:[#allocation7 + $0x28] sm:$0xff]  ;;  %v805_v43 = vld [vmem:[#allocation7 + $0x20] sm:$0xff]  ;;  %v820_v44 = vld [vmem:[#allocation7 + $0x98] sm:$0xff] }
  0x70   : > { %1172 = vmatprep.subr.mxu0 %v830_v24  ;;  %v804_v45 = vld [vmem:[#allocation7 + $0x18] sm:$0xff]  ;;  %v819_v46 = vld [vmem:[#allocation7 + $0x90] sm:$0xff]  ;;  %v818_v48 = vld [vmem:[#allocation7 + $0x88] sm:$0xff] }
  0x71   : > { %1173 = vmatpush3.msra.mxu0 %v814_v25  ;;  %v803_v47 = vld [vmem:[#allocation7 + $0x10] sm:$0xff]  ;;  %v802_v49 = vld [vmem:[#allocation7 + $0x8] sm:$0xff]  ;;  %v817_v50 = vld [vmem:[#allocation7 + $0x80] sm:$0xff] }
  0x72   : > { %1174 = vmatprep.subr.mxu0 %v829_v26  ;;  %v801_v51 = vld [vmem:[#allocation7] sm:$0xff] }
  0x73   : > { %1175 = vmatpush3.msra.mxu0 %v813_v27  ;;  %v676_v55 = vld [vmem:[%s1853_s4] sm:$0x3] }
  0x74   : > { %1176 = vmatprep.subr.mxu0 %v828_v28  ;;  %v681_v57 = vrot.slane %v676_v55, %v1737_v54  ;;  %v685_v61 = vrot.slane %v676_v55, %v1742_v56 }
  0x75   : > { %1177 = vmatpush3.msra.mxu0 %v812_v29 }
  0x76   : > { %1178 = vmatprep.subr.mxu0 %v827_v30 }
  0x77   : > { %1179 = vmatpush3.msra.mxu0 %v811_v31 }
  0x78   : > { %1180 = vmatprep.subr.mxu0 %v826_v32 }
  0x79   : > { %1181 = vmatpush3.msra.mxu0 %v810_v33 }
  0x7a   : > { %1182 = vmatprep.subr.mxu0 %v825_v34 }
  0x7b   : > { %1183 = vmatpush3.msra.mxu0 %v809_v35 }
  0x7c   : > { %1184 = vmatprep.subr.mxu0 %v824_v36 }
  0x7d   : > { %1185 = vmatpush3.msra.mxu0 %v808_v37 }
  0x7e   : > { %1186 = vmatprep.subr.mxu0 %v823_v38 }
  0x7f   : > { %1187 = vmatpush3.msra.mxu0 %v807_v39 }
  0x80   : > { %1188 = vmatprep.subr.mxu0 %v822_v40 }
  0x81   : > { %1189 = vmatpush3.msra.mxu0 %v806_v41 }
  0x82   : > { %1190 = vmatprep.subr.mxu0 %v821_v42  ;;  %v1457_v42 = vmov 1966171168  }
  0x83   : > { %1191 = vmatpush3.msra.mxu0 %v805_v43  ;;  %v739_v43 = vunpack.c.l.s4 %v1457_v42 }
  0x84   : > { %1192 = vmatprep.subr.mxu0 %v820_v44 }
  0x85   : > { %1193 = vmatpush3.msra.mxu0 %v804_v45  ;;  %v740_v44 = vunpack.c.0.s8 %v739_v43 }
  0x86   : > { %1194 = vmatprep.subr.mxu0 %v819_v46 }
  0x87   : > { %1195 = vmatpush3.msra.mxu0 %v803_v47  ;;  %v743_v46 = vsub.s32 %v740_v44, %v679_v53  ;;  %v697_v53 = vld [vmem:[%s1855_s6] sm:$0x3] }
  0x88   : > { %1196 = vmatprep.subr.mxu0 %v818_v48 }
  0x89   : > { %1197 = vmatpush3.msra.mxu0 %v802_v49 }
  0x8a   : > { %1198 = vmatprep.subr.mxu0 %v817_v50  ;;  %v696_v50 = vld [vmem:[%s1854_s5] sm:$0x3] }
  0x8b   : > { %1199 = vmatpush3.msra.mxu0 %v801_v51 }
 0x12b   : > { %v597_v58 = vpop.f32.mrf.mxu0  ;;  %v671_v59 = vpop.f32.mrf.mxu1 }
 0x12c   : > { %v672_v60 = vadd.f32 %v671_v59, %v597_v58 }
 0x12d   : > { %v599_v62 = vpop.f32.mrf.mxu0  ;;  %v673_v63 = vpop.f32.mrf.mxu1 }
 0x12e   : > { %v688_v0 = vadd.f32 %v681_v57, %v672_v60  ;;  %v674_v2 = vadd.f32 %v673_v63, %v599_v62 }
 0x130   : > { %vm690_vm1 = vcmp.ge.f32.partialorder %v688_v0, 0.0  ;;  %v692_v3 = vmul.f32 0.2, %v688_v0  ;;  %v689_v4 = vadd.f32 %v685_v61, %v674_v2 }
 0x132   : > { %v694_v5 = vsel %vm690_vm1, %v688_v0, %v692_v3  ;;  %vm691_vm2 = vcmp.ge.f32.partialorder %v689_v4, 0.0  ;;  %v693_v6 = vmul.f32 0.2, %v689_v4 }
 0x133   : > { %v698_v7 = vrot.slane %v694_v5, 4 }
 0x134   : > { %v695_v8 = vsel %vm691_vm2, %v689_v4, %v693_v6 }
 0x135   : > { %v699_v9 = vadd.f32 %v698_v7, %v694_v5  ;;  %v704_v10 = vrot.slane %v695_v8, 4 }
 0x137   : > { %v700_v11 = vrot.slane %v699_v9, 2  ;;  %v705_v12 = vadd.f32 %v704_v10, %v695_v8  ;;  %v961_v10 = vld [vmem:[%s1860_s11 + $0x58] sm:$0xff] }
 0x139   : > { %v701_v13 = vadd.f32 %v700_v11, %v699_v9  ;;  %v706_v14 = vrot.slane %v705_v12, 2  ;;  %v965_v9 = vld [vmem:[%s1860_s11 + $0x78] sm:$0xff]  ;;  %v960_v11 = vld [vmem:[%s1860_s11 + $0x50] sm:$0xff] }
 0x13a   : > { %1221 = vmatpush3.msra.mxu1 %v965_v9 }
 0x13b   : > { %v702_v15 = vrot.slane %v701_v13, 1  ;;  %v707_v16 = vadd.f32 %v706_v14, %v705_v12  ;;  %1222 = vmatprep.subr.mxu1 %v1456_v1  ;;  %v959_v12 = vld [vmem:[%s1860_s11 + $0x48] sm:$0xff]  ;;  %v957_v14 = vld [vmem:[%s1860_s11 + $0x38] sm:$0xff] }
 0x13d   : > { %v703_v17 = vadd.f32 %v702_v15, %v701_v13  ;;  %v708_v18 = vrot.slane %v707_v16, 1  ;;  %v958_v13 = vld [vmem:[%s1860_s11 + $0x40] sm:$0xff]  ;;  %v956_v15 = vld [vmem:[%s1860_s11 + $0x30] sm:$0xff] }
 0x13f   : > { %v711_v19 = vmul.f32 0.125, %v703_v17  ;;  %v709_v20 = vadd.f32 %v708_v18, %v707_v16  ;;  %v955_v16 = vld [vmem:[%s1860_s11 + $0x28] sm:$0xff]  ;;  %v954_v17 = vld [vmem:[%s1860_s11 + $0x20] sm:$0xff]  ;;  %v953_v18 = vld [vmem:[%s1860_s11 + $0x18] sm:$0xff] }
 0x141   : > { %v713_v21 = vsub.f32 %v694_v5, %v711_v19  ;;  %v712_v22 = vmul.f32 0.125, %v709_v20  ;;  %v951_v20 = vld [vmem:[%s1860_s11 + $0x8] sm:$0xff] }
 0x143   : > { %v715_v23 = vmul.f32 %v713_v21, %v713_v21  ;;  %v714_v24 = vsub.f32 %v695_v8, %v712_v22  ;;  %v950_v21 = vld [vmem:[%s1860_s11] sm:$0xff] }
 0x145   : > { %v717_v25 = vrot.slane %v715_v23, 4  ;;  %v716_v26 = vmul.f32 %v714_v24, %v714_v24 }
 0x147   : > { %v718_v27 = vadd.f32 %v717_v25, %v715_v23  ;;  %v723_v28 = vrot.slane %v716_v26, 4  ;;  %v1163_v23 = vld [vmem:[%s1857_s8] ss:$0 sm:$0xff] }
 0x149   : > { %v719_v29 = vrot.slane %v718_v27, 2  ;;  %v724_v30 = vadd.f32 %v723_v28, %v716_v26 }
 0x14b   : > { %v720_v31 = vadd.f32 %v719_v29, %v718_v27  ;;  %v725_v32 = vrot.slane %v724_v30, 2 }
 0x14d   : > { %v721_v33 = vrot.slane %v720_v31, 1  ;;  %v726_v34 = vadd.f32 %v725_v32, %v724_v30 }
 0x14f   : > { %v722_v35 = vadd.f32 %v721_v33, %v720_v31  ;;  %v727_v36 = vrot.slane %v726_v34, 1 }
 0x151   : > { %v729_v37 = vmul.f32 0.125, %v722_v35  ;;  %v728_v38 = vadd.f32 %v727_v36, %v726_v34 }
 0x153   : > { %v731_v39 = vadd.f32 1e-05, %v729_v37  ;;  %v730_v40 = vmul.f32 0.125, %v728_v38 }
 0x155   : > { %v732_v41 = vadd.f32 1e-05, %v730_v40  ;;  %1315 = vrsqrt.f32 %v731_v39 }
 0x157   : > { %1317 = vrsqrt.f32 %v732_v41 }
 0x162   : > { %v1316_v45 = vpop.eup %1315 }
 0x164   : > { %v1318_v47 = vpop.eup %1317 }
 0x165   : > { %v737_v48 = vcombine.low %v1316_v45, %v1318_v47  ;;  %v913_v45 = vld [vmem:[%s1858_s9] sm:$0x1] }
 0x167   : > { %v744_v49 = vrot.slane %v737_v48, %v743_v46  ;;  %v914_v48 = vld [vmem:[%s1884_s19] sm:$0x1] }
 0x169   : > { %v751_v51 = vrot.slane %v744_v49, %v743_v46 }
 0x16b   : > { %v753_v52 = vmul.f32 %v751_v51, %v696_v50 }
 0x16d   : > { %v758_v55 = vrot.slane %v753_v52, %v1737_v54  ;;  %v762_v57 = vrot.slane %v753_v52, %v1742_v56 }
 0x16f   : > { %v765_v58 = vmul.f32 %v758_v55, %v711_v19  ;;  %v766_v59 = vmul.f32 %v762_v57, %v712_v22  ;;  %v787_v0 = vmul.f32 %v762_v57, %v695_v8  ;;  %v786_v3 = vmul.f32 %v758_v55, %v694_v5  ;;  %v964_v8 = vld [vmem:[%s1860_s11 + $0x70] sm:$0xff]  ;;  %v962_v5 = vld [vmem:[%s1860_s11 + $0x60] sm:$0xff] }
 0x170   : > { %1223 = vmatpush3.msra.mxu1 %v964_v8  ;;  %v952_v19 = vld [vmem:[%s1860_s11 + $0x10] sm:$0xff] }
 0x171   : > { %v769_v60 = vcombine.low %v765_v58, %v766_v59  ;;  %1224 = vmatprep.subr.mxu1 %v1456_v1  ;;  %v1164_v58 = vld [vmem:[#allocation2] ss:$0 sm:$0xff] }
 0x173   : > { %v776_v61 = vrot.slane %v769_v60, %v743_v46 }
 0x175   : > { %v783_v62 = vrot.slane %v776_v61, %v743_v46 }
 0x177   : > { %v785_v63 = vsub.f32 %v697_v53, %v783_v62 }
 0x179   : > { %v796_v2 = vrot.slane %v785_v63, %v1742_v56  ;;  %v792_v4 = vrot.slane %v785_v63, %v1737_v54  ;;  %v963_v56 = vld [vmem:[%s1860_s11 + $0x68] sm:$0xff] }
 0x17a   : > { %1225 = vmatpush3.msra.mxu1 %v963_v56 }
 0x17b   : > { %v800_v6 = vadd.f32 %v796_v2, %v787_v0  ;;  %v799_v7 = vadd.f32 %v792_v4, %v786_v3  ;;  %1226 = vmatprep.subr.mxu1 %v1456_v1 }
 0x17c   : > { %1227 = vmatpush3.msra.mxu1 %v962_v5 }
 0x17d   : > { %904 = vmatprep.mubr.f32.mxu0 %v800_v6  ;;  %1228 = vmatprep.subr.mxu1 %v1456_v1 }
 0x17e   : > { %905 = vmatmul.mubr.f32.vlgmr.msra.gmra.mxu0 %v799_v7  ;;  %1229 = vmatpush3.msra.mxu1 %v961_v10 }
 0x17f   : > { %1230 = vmatprep.subr.mxu1 %v1456_v1 }
 0x180   : > { %1231 = vmatpush3.msra.mxu1 %v960_v11 }
 0x181   : > { %1232 = vmatprep.subr.mxu1 %v1456_v1 }
 0x182   : > { %1233 = vmatpush3.msra.mxu1 %v959_v12 }
 0x183   : > { %1234 = vmatprep.subr.mxu1 %v1456_v1 }
 0x184   : > { %1235 = vmatpush3.msra.mxu1 %v958_v13 }
 0x185   : > { %1236 = vmatprep.subr.mxu1 %v1456_v1 }
 0x186   : > { %1237 = vmatpush3.msra.mxu1 %v957_v14 }
 0x187   : > { %1238 = vmatprep.subr.mxu1 %v1456_v1 }
 0x188   : > { %1239 = vmatpush3.msra.mxu1 %v956_v15 }
 0x189   : > { %1240 = vmatprep.subr.mxu1 %v1456_v1 }
 0x18a   : > { %1241 = vmatpush3.msra.mxu1 %v955_v16 }
 0x18b   : > { %1242 = vmatprep.subr.mxu1 %v1456_v1 }
 0x18c   : > { %1243 = vmatpush3.msra.mxu1 %v954_v17 }
 0x18d   : > { %1244 = vmatprep.subr.mxu1 %v1456_v1 }
 0x18e   : > { %1245 = vmatpush3.msra.mxu1 %v953_v18 }
 0x18f   : > { %1246 = vmatprep.subr.mxu1 %v1456_v1 }
 0x190   : > { %1247 = vmatpush3.msra.mxu1 %v952_v19 }
 0x191   : > { %1248 = vmatprep.subr.mxu1 %v1456_v1 }
 0x192   : > { %1249 = vmatpush3.msra.mxu1 %v951_v20 }
 0x193   : > { %1250 = vmatprep.subr.mxu1 %v1456_v1 }
 0x194   : > { %1251 = vmatpush3.msra.mxu1 %v950_v21 }
 0x23e   : > { %v1200_v22 = vpop.f32.mrf.mxu0 }
 0x240   : > { %v1201_v24 = vpop.f32.mrf.mxu0 }
 0x241   : > { %v1202_v25 = vadd.f32 %v1201_v24, %v1200_v22 }
 0x243   : > { %v907_v26 = vadd.f32 %v1202_v25, %v1163_v23 }
 0x245   : > { %vm910_vm4 = vcmp.ge.f32.partialorder %v907_v26, 0.0  ;;  %v911_v27 = vmul.f32 0.2, %v907_v26 }
 0x247   : > { %v912_v28 = vsel %vm910_vm4, %v907_v26, %v911_v27 }
 0x248   : > { %v915_v29 = vrot.slane %v912_v28, 4 }
 0x24a   : > { %v916_v30 = vadd.f32 %v915_v29, %v912_v28 }
 0x24c   : > { %v917_v31 = vrot.slane %v916_v30, 2 }
 0x24e   : > { %v918_v32 = vadd.f32 %v917_v31, %v916_v30 }
 0x250   : > { %v919_v33 = vrot.slane %v918_v32, 1 }
 0x252   : > { %v920_v34 = vadd.f32 %v919_v33, %v918_v32 }
 0x254   : > { %v921_v35 = vmul.f32 0.125, %v920_v34 }
 0x256   : > { %v922_v1 = vsub.f32 %v912_v28, %v921_v35 }
 0x258   : > { %v923_v36 = vmul.f32 %v922_v1, %v922_v1 }
 0x25a   : > { %v924_v37 = vrot.slane %v923_v36, 4 }
 0x25c   : > { %v925_v38 = vadd.f32 %v924_v37, %v923_v36 }
 0x25e   : > { %v926_v39 = vrot.slane %v925_v38, 2 }
 0x260   : > { %v927_v40 = vadd.f32 %v926_v39, %v925_v38 }
 0x262   : > { %v928_v41 = vrot.slane %v927_v40, 1 }
 0x264   : > { %v929_v42 = vadd.f32 %v928_v41, %v927_v40 }
 0x266   : > { %v930_v43 = vmul.f32 0.125, %v929_v42 }
 0x268   : > { %v931_v44 = vadd.f32 1e-05, %v930_v43 }
 0x26a   : > { %1319 = vrsqrt.f32 %v931_v44 }
 0x277   : > { %v1320_v46 = vpop.eup %1319 }
 0x278   : > { %v933_v47 = vmul.f32 %v1320_v46, %v913_v45 }
 0x27a   : > { %v934_v49 = vmul.f32 %v933_v47, %v921_v35  ;;  %v940_v50 = vrot.slane %v933_v47, %v1737_v54 }
 0x27c   : > { %v935_v51 = vsub.f32 %v914_v48, %v934_v49  ;;  %v942_v52 = vmul.f32 %v940_v50, %v912_v28 }
 0x27e   : > { %v947_v55 = vrot.slane %v935_v51, %v1737_v54 }
 0x280   : > { %v949_v57 = vadd.f32 %v947_v55, %v942_v52 }
 0x282   : > { %1253 = vmatmul.mubr.f32.vlgmr.msra.gmra.mxu1 %v949_v57 }
 0x342   : > { %v1039_v59 = vpop.f32.mrf.mxu1 }
 0x343   : > { %v1040_v60 = vadd.f32 %v1164_v58, %v1039_v59 }
 0x344   : > { %v1254_v61 = vpop.f32.mrf.mxu1 }
 0x345   : > { %v1165_v53 = vmul.f32 -1.442695, %v1040_v60 }
 0x347   : > { %1321 = vpow2.f32 %v1165_v53 }
 0x354   : > { %v1322_v62 = vpop.eup %1321 }
 0x355   : > { %v1046_v63 = vadd.f32 1.0, %v1322_v62 }
 0x357   : > { %1323 = vrcp.f32 %v1046_v63 }
 0x364   : > { %v1324_v54 = vpop.eup %1323 }
 0x365   : > { %1050 = vst.msk [vmem:[%s508_s30] sm:$0xff] %vm1049_vm5, %v1324_v54 }
 0x366 PF: > { %s1886_s30 = sld [smem:[#allocation12_spill]]  ;;  %s1889_s27 = smov %s1441_s28 }
 0x367   : > { %s1887_s22 = sld [smem:[#allocation11_spill]] }
 0x368   : > { %s1888_s29 = sld [smem:[#allocation13_spill]] }
 0x36c   : > { %p28_p6 = scmp.ge.s32.totalorder %s1886_s30, 6  }
 0x36d   : > { %s1890_s28 = smov %s1887_s22 }
 0x36e   :  { %30 = sbr.rel (!%p28_p6) target bundleno = 9 (0x9), region = 129 }
 0x373   :  { %1070 = vsyncpa [#allocation4], 1 }
 0x374   :  { %1072 = vsyncpa [#allocation4 + $0x1], 1 }
 0x375   :  { %1073 = vsyncpa [#allocation6], 1 }
 0x376   :  { %1075 = vsyncpa [#allocation6 + $0x1], 1 }

</bundles_post_ra>
